<compile_context>
chip_gen: v7x
topology: tpu7x:2x2x1
jax: 0.10.0
libtpu: 0.0.40
codegen_flags: <defaults>
</compile_context>

<pallas_src>
import jax
import jax.numpy as jnp
from jax.experimental import pallas as pl
from jax.experimental.pallas import tpu as pltpu

IN_DIM = 784
HIDDEN_DIM = 256
OUT_DIM = 10
OUT_PAD = 128          # lane-dense output width (multiple of 128)
NEG_LOGIT = -1e30      # effectively -inf for padded softmax columns


def mlp_kernel(x_ref, w1_ref, b1_ref, w2_ref, b2_ref, o_ref):
    # Hidden layer: [TB, 784] @ [784, 256] on the MXU, f32 accumulation.
    # Runs in x's dtype (f32 or bf16) -- no wrapper-side cast of the x stream.
    h = jnp.dot(x_ref[...], w1_ref[...], preferred_element_type=jnp.float32)
    h = h + b1_ref[...]
    # sigmoid(h) == 0.5 * (tanh(0.5*h) + 1): tanh runs on the (otherwise idle)
    # EUP slot instead of a VALU divide chain.  All elementwise math is f32.
    h = 0.5 * (jnp.tanh(0.5 * h) + 1.0)
    # Output layer in bf16 operands / f32 accumulation: [TB,256] @ [256,128]
    # (columns 10..127 of w2 are zero; their bias is -1e30 so they vanish
    # under softmax).  The h->bf16 cast is VMEM-only, no HBM cost.
    logits = jnp.dot(h.astype(w2_ref.dtype), w2_ref[...],
                     preferred_element_type=jnp.float32)
    logits = logits + b2_ref[...]
    # Numerically stable softmax along the lane (feature) axis.
    m = jnp.max(logits, axis=-1, keepdims=True)
    e = jnp.exp(logits - m)
    denom = jnp.sum(e, axis=-1, keepdims=True)
    inv = pl.reciprocal(denom, approx=True)      # EUP reciprocal, frees VALU
    o_ref[...] = (e * inv).astype(o_ref.dtype)


def _round_up(n, m):
    return ((n + m - 1) // m) * m


def network_forward(x, w1, b1, w2, b2, *, tb=1024,
                    out_dtype=jnp.float32, return_padded=False):
    """Forward pass equivalent to Network.forward.

    x:  [B, 784] (f32, or bf16 for the reduced-bandwidth path -- the first
        matmul runs in x's dtype; no cast pass over x happens here).
    w1: [784, 256], b1: [1|(),256], w2: [256,10], b2: [1|(),10].
    tb: max batch tile (rows per grid step).
    out_dtype / return_padded: emit bf16 and/or the lane-padded [B,128]
        buffer to cut output-side HBM traffic when the consumer allows it.
    """
    B = x.shape[0]
    assert x.shape[1] == IN_DIM

    # Tiny weight-side prep (cheap; does NOT touch the x stream).
    w1 = jnp.asarray(w1, x.dtype)
    b1 = jnp.asarray(b1, jnp.float32).reshape(1, HIDDEN_DIM)
    w2p = jnp.zeros((HIDDEN_DIM, OUT_PAD), jnp.bfloat16).at[:, :OUT_DIM].set(
        jnp.asarray(w2, jnp.bfloat16))
    b2p = jnp.full((1, OUT_PAD), NEG_LOGIT, jnp.float32).at[:, :OUT_DIM].set(
        jnp.asarray(b2, jnp.float32).reshape(1, OUT_DIM))

    # Batch tile: multiple of 8 (sublane rule); capped so the grid has >=2
    # steps whenever B allows (keeps both v7x TensorCores fed).  No padding
    # of x: Pallas masks the ragged last block's OOB rows (their math is
    # garbage but row-independent and never stored).
    if B <= 8:
        tb_eff = 8
    else:
        tb_eff = max(8, min(tb, _round_up(pl.cdiv(B, 2), 8)))
    grid_b = pl.cdiv(B, tb_eff)

    itemsize_x = jnp.dtype(x.dtype).itemsize
    itemsize_o = jnp.dtype(out_dtype).itemsize

    # Advisory cost estimate for XLA scheduling around the custom call.
    cost = pl.CostEstimate(
        flops=2 * B * (IN_DIM * HIDDEN_DIM + HIDDEN_DIM * OUT_PAD),
        transcendentals=B * (HIDDEN_DIM + OUT_PAD + 1),
        bytes_accessed=(B * IN_DIM * itemsize_x
                        + B * OUT_PAD * itemsize_o
                        + IN_DIM * HIDDEN_DIM * itemsize_x
                        + HIDDEN_DIM * OUT_PAD * 2
                        + (HIDDEN_DIM + OUT_PAD) * 4),
    )

    # Rough per-step VMEM budget (double-buffered streams + resident weights
    # + f32 intermediates).  Only raise the scoped limit when the default
    # (16 MiB on v5e) would be exceeded; cap at v7x's 64 MiB physical VMEM.
    vmem_est = (2 * tb_eff * IN_DIM * itemsize_x
                + 2 * tb_eff * OUT_PAD * itemsize_o
                + 2 * IN_DIM * HIDDEN_DIM * itemsize_x
                + 2 * HIDDEN_DIM * OUT_PAD * 2
                + 8 * 1024
                + 8 * tb_eff * max(HIDDEN_DIM, OUT_PAD))
    compiler_kwargs = dict(dimension_semantics=("parallel",))
    if vmem_est > (16 << 20):
        compiler_kwargs["vmem_limit_bytes"] = int(min(vmem_est * 5 // 4, 64 << 20))

    # NOTE: IN_DIM=784 stays unpadded: the block equals the full extent
    # (legal), and padding x in the wrapper would add an extra HBM pass.
    out = pl.pallas_call(
        mlp_kernel,
        out_shape=jax.ShapeDtypeStruct((B, OUT_PAD), out_dtype),
        grid_spec=pltpu.PrefetchScalarGridSpec(
            num_scalar_prefetch=0,
            grid=(grid_b,),
            in_specs=[
                pl.BlockSpec((tb_eff, IN_DIM), lambda i: (i, 0)),       # streamed
                pl.BlockSpec((IN_DIM, HIDDEN_DIM), lambda i: (0, 0)),   # resident
                pl.BlockSpec((1, HIDDEN_DIM), lambda i: (0, 0)),        # resident
                pl.BlockSpec((HIDDEN_DIM, OUT_PAD), lambda i: (0, 0)),  # resident
                pl.BlockSpec((1, OUT_PAD), lambda i: (0, 0)),           # resident
            ],
            out_specs=pl.BlockSpec((tb_eff, OUT_PAD), lambda i: (i, 0)),
        ),
        compiler_params=pltpu.CompilerParams(**compiler_kwargs),
        cost_estimate=cost,
    )(x, w1, b1, w2p, b2p)

    if return_padded:
        return out                      # [B, 128]; cols 10..127 are exactly 0
    return out[:, :OUT_DIM]


def init_params(key):
    # Mimic PyTorch's default Linear init: U(-1/sqrt(fan_in), 1/sqrt(fan_in)).
    k1, k2, k3, k4 = jax.random.split(key, 4)
    bound1 = 1.0 / jnp.sqrt(IN_DIM)
    bound2 = 1.0 / jnp.sqrt(HIDDEN_DIM)
    w1 = jax.random.uniform(k1, (IN_DIM, HIDDEN_DIM), jnp.float32, -bound1, bound1)
    b1 = jax.random.uniform(k2, (1, HIDDEN_DIM), jnp.float32, -bound1, bound1)
    w2 = jax.random.uniform(k3, (HIDDEN_DIM, OUT_DIM), jnp.float32, -bound2, bound2)
    b2 = jax.random.uniform(k4, (1, OUT_DIM), jnp.float32, -bound2, bound2)
    return w1, b1, w2, b2


def reference_forward(x, w1, b1, w2, b2):
    h = jax.nn.sigmoid(x @ w1 + b1)
    return jax.nn.softmax(h @ w2 + b2, axis=1)


if __name__ == "__main__":
    key = jax.random.PRNGKey(0)
    kx, kp = jax.random.split(key)

    # B=50 exercises the ragged edge block (no wrapper-side padding of x),
    # the multi-step grid, and the [:, :10] lane slice.
    B = 50
    x = jax.random.normal(kx, (B, IN_DIM), jnp.float32)
    w1, b1, w2, b2 = init_params(kp)

    ref = reference_forward(x, w1, b1, w2, b2)

    # 1) f32-x path with an explicit small tile (grid of 4, ragged last block).
    # Tolerances account for approx-EUP reciprocal (~2^-12 rel), the bf16
    # second matmul, and MXU rounding differences vs the XLA reference.
    out = network_forward(x, w1, b1, w2, b2, tb=16)
    out = jax.block_until_ready(out)
    assert out.shape == (B, OUT_DIM)
    assert jnp.allclose(out, ref, atol=5e-3, rtol=1e-2), "f32 mismatch vs reference"
    assert jnp.allclose(jnp.sum(out, axis=1), jnp.ones((B,)), atol=5e-3)

    # 2) bf16-fed first matmul: x already *arrives* bf16 (no wrapper cast pass
    # inside network_forward); default tb -> tb_eff=32, 2-step grid.
    out_bf16 = network_forward(x.astype(jnp.bfloat16), w1, b1, w2, b2)
    out_bf16 = jax.block_until_ready(out_bf16)
    assert out_bf16.shape == (B, OUT_DIM)
    assert jnp.allclose(out_bf16, ref, atol=3e-2, rtol=5e-2), "bf16 mismatch vs reference"
    assert jnp.allclose(jnp.sum(out_bf16, axis=1), jnp.ones((B,)), atol=1e-2)

    # 3) Reduced output-traffic path: bf16 lane-padded [B,128] buffer returned
    # directly (consumer slices/fuses it).  Padded columns are exactly 0.
    out_pad = network_forward(x, w1, b1, w2, b2,
                              out_dtype=jnp.bfloat16, return_padded=True)
    out_pad = jax.block_until_ready(out_pad)
    assert out_pad.shape == (B, OUT_PAD)
    assert jnp.max(jnp.abs(out_pad[:, OUT_DIM:].astype(jnp.float32))) < 1e-6
    assert jnp.allclose(out_pad[:, :OUT_DIM].astype(jnp.float32), ref,
                        atol=2e-2, rtol=5e-2), "padded/bf16-out mismatch vs reference"

    print("KERNEL_OK")
</pallas_src>

<mosaic_0001>
module attributes {stable_mosaic.version = 11 : i64} {
  func.func @mlp_kernel(%arg0: i32, %arg1: memref<16x784xf32, #tpu.memory_space<vmem>>, %arg2: memref<784x256xf32, #tpu.memory_space<vmem>>, %arg3: memref<1x256xf32, #tpu.memory_space<vmem>>, %arg4: memref<256x128xbf16, #tpu.memory_space<vmem>>, %arg5: memref<1x128xf32, #tpu.memory_space<vmem>>, %arg6: memref<16x128xf32, #tpu.memory_space<vmem>>) attributes {dimension_semantics = [#tpu.dimension_semantics<parallel>], iteration_bounds = array<i64: 4>, scalar_prefetch = 0 : i64, scratch_operands = 0 : i64, tpu.core_type = #tpu.core_type<tc>, window_params = [{transform_indices = @transform_0, window_bounds = array<i64: 16, 784>}, {pipeline_mode = #tpu.pipeline_mode<synchronous>, transform_indices = @transform_1, window_bounds = array<i64: 784, 256>}, {pipeline_mode = #tpu.pipeline_mode<synchronous>, transform_indices = @transform_2, window_bounds = array<i64: 1, 256>}, {pipeline_mode = #tpu.pipeline_mode<synchronous>, transform_indices = @transform_3, window_bounds = array<i64: 256, 128>}, {pipeline_mode = #tpu.pipeline_mode<synchronous>, transform_indices = @transform_4, window_bounds = array<i64: 1, 128>}, {transform_indices = @transform_5, window_bounds = array<i64: 16, 128>}]} {
    %c0 = arith.constant 0 : index
    %c0_0 = arith.constant 0 : index
    %0 = vector.load %arg1[%c0, %c0_0] : memref<16x784xf32, #tpu.memory_space<vmem>>, vector<16x784xf32>
    %c0_1 = arith.constant 0 : index
    %c0_2 = arith.constant 0 : index
    %1 = vector.load %arg2[%c0_1, %c0_2] : memref<784x256xf32, #tpu.memory_space<vmem>>, vector<784x256xf32>
    %cst = arith.constant dense<0.000000e+00> : vector<16x256xf32>
    %2 = tpu.matmul %0, %1, %cst {dimension_numbers = #tpu.dot_dimension_numbers<[1], [0], [0], [1], [0, 0, 1, 1], [], []>} : vector<16x784xf32>, vector<784x256xf32>, vector<16x256xf32> -> vector<16x256xf32>
    %c0_3 = arith.constant 0 : index
    %c0_4 = arith.constant 0 : index
    %3 = vector.load %arg3[%c0_3, %c0_4] : memref<1x256xf32, #tpu.memory_space<vmem>>, vector<1x256xf32>
    %4 = vector.broadcast %3 : vector<1x256xf32> to vector<16x256xf32>
    %5 = arith.addf %2, %4 : vector<16x256xf32>
    %cst_5 = arith.constant 5.000000e-01 : f32
    %6 = vector.broadcast %cst_5 : f32 to vector<16x256xf32>
    %7 = arith.mulf %6, %5 : vector<16x256xf32>
    %8 = math.tanh %7 : vector<16x256xf32>
    %cst_6 = arith.constant 1.000000e+00 : f32
    %9 = vector.broadcast %cst_6 : f32 to vector<16x256xf32>
    %10 = arith.addf %8, %9 : vector<16x256xf32>
    %cst_7 = arith.constant 5.000000e-01 : f32
    %11 = vector.broadcast %cst_7 : f32 to vector<16x256xf32>
    %12 = arith.mulf %11, %10 : vector<16x256xf32>
    %13 = arith.truncf %12 : vector<16x256xf32> to vector<16x256xbf16>
    %c0_8 = arith.constant 0 : index
    %c0_9 = arith.constant 0 : index
    %14 = vector.load %arg4[%c0_8, %c0_9] : memref<256x128xbf16, #tpu.memory_space<vmem>>, vector<256x128xbf16>
    %cst_10 = arith.constant dense<0.000000e+00> : vector<16x128xf32>
    %15 = tpu.matmul %13, %14, %cst_10 {dimension_numbers = #tpu.dot_dimension_numbers<[1], [0], [0], [1], [0, 0, 1, 1], [], []>} : vector<16x256xbf16>, vector<256x128xbf16>, vector<16x128xf32> -> vector<16x128xf32>
    %c0_11 = arith.constant 0 : index
    %c0_12 = arith.constant 0 : index
    %16 = vector.load %arg5[%c0_11, %c0_12] : memref<1x128xf32, #tpu.memory_space<vmem>>, vector<1x128xf32>
    %17 = vector.broadcast %16 : vector<1x128xf32> to vector<16x128xf32>
    %18 = arith.addf %15, %17 : vector<16x128xf32>
    %cst_13 = arith.constant dense<0xFF800000> : vector<16xf32>
    %19 = vector.multi_reduction <maximumf>, %18, %cst_13 [1] : vector<16x128xf32> to vector<16xf32>
    %20 = vector.shape_cast %19 : vector<16xf32> to vector<16x1xf32>
    %21 = vector.broadcast %20 : vector<16x1xf32> to vector<16x128xf32>
    %22 = arith.subf %18, %21 : vector<16x128xf32>
    %23 = math.exp %22 : vector<16x128xf32>
    %cst_14 = arith.constant dense<0.000000e+00> : vector<16xf32>
    %24 = vector.multi_reduction <add>, %23, %cst_14 [1] : vector<16x128xf32> to vector<16xf32>
    %25 = vector.shape_cast %24 : vector<16xf32> to vector<16x1xf32>
    %26 = tpu.reciprocal %25 {approx = true} : vector<16x1xf32> -> vector<16x1xf32>
    %27 = vector.broadcast %26 : vector<16x1xf32> to vector<16x128xf32>
    %28 = arith.mulf %23, %27 : vector<16x128xf32>
    %c0_15 = arith.constant 0 : index
    %c0_16 = arith.constant 0 : index
    %29 = vector.load %arg6[%c0_15, %c0_16] : memref<16x128xf32, #tpu.memory_space<vmem>>, vector<16x128xf32>
    tpu.vector_store %arg6[%c0_15, %c0_16], %28 {strides = array<i32>} : memref<16x128xf32, #tpu.memory_space<vmem>>, vector<16x128xf32>,
    return
  }
  func.func @transform_0(%arg0: i32) -> (i32, i32) {
    %c0_i32 = arith.constant 0 : i32
    %c0_i32_0 = arith.constant 0 : i32
    return %arg0, %c0_i32 : i32, i32
  }
  func.func @transform_1(%arg0: i32) -> (i32, i32) {
    %c0_i32 = arith.constant 0 : i32
    %c0_i32_0 = arith.constant 0 : i32
    %c0_i32_1 = arith.constant 0 : i32
    return %c0_i32, %c0_i32_0 : i32, i32
  }
  func.func @transform_2(%arg0: i32) -> (i32, i32) {
    %c0_i32 = arith.constant 0 : i32
    %c0_i32_0 = arith.constant 0 : i32
    %c0_i32_1 = arith.constant 0 : i32
    return %c0_i32, %c0_i32_0 : i32, i32
  }
  func.func @transform_3(%arg0: i32) -> (i32, i32) {
    %c0_i32 = arith.constant 0 : i32
    %c0_i32_0 = arith.constant 0 : i32
    %c0_i32_1 = arith.constant 0 : i32
    return %c0_i32, %c0_i32_0 : i32, i32
  }
  func.func @transform_4(%arg0: i32) -> (i32, i32) {
    %c0_i32 = arith.constant 0 : i32
    %c0_i32_0 = arith.constant 0 : i32
    %c0_i32_1 = arith.constant 0 : i32
    return %c0_i32, %c0_i32_0 : i32, i32
  }
  func.func @transform_5(%arg0: i32) -> (i32, i32) {
    %c0_i32 = arith.constant 0 : i32
    %c0_i32_0 = arith.constant 0 : i32
    return %arg0, %c0_i32 : i32, i32
  }
}

</mosaic_0001>

<bundles_post_ra>
// kernel: tpu_custom_call.1
= control target key start
LH: loop header
LB: loop body
LE: loop exit
PB: predicated region body
PF: predicated region fallthrough
CT: control target
= control target key end

     0   :  { %10 = vsyncpa [#allocation3], 0  ;;  %s2004_s0 = inlined_call_operand.hbm [shape: f32[50,784], index: 0, kind: input, shape index: {}]   ;;  %s2005_s1 = inlined_call_operand.hbm [shape: f32[784,256], index: 1, kind: input, shape index: {}]   ;;  %s2006_s2 = inlined_call_operand.vmem [shape: f32[1,256], index: 2, kind: input, shape index: {}]   ;;  %s2007_s3 = inlined_call_operand.hbm [shape: bf16[256,128], index: 3, kind: input, shape index: {}]   ;;  %s2008_s4 = inlined_call_operand.vmem [shape: f32[1,128], index: 4, kind: input, shape index: {}]   ;;  %s2009_s5 = inlined_call_operand.hbm [shape: f32[50,128], index: 5, kind: output, shape index: {}]  }
   0x1   :  { %12 = vsyncpa [#allocation3 + $0x1], 0 }
   0x2   :  { %13 = vsyncpa [#allocation6], 0 }
   0x3   :  { %14 = vsyncpa [#allocation4], 0 }
   0x4   :  { %16 = vsyncpa [#allocation4 + $0x1], 0  ;;  %s1737_s18 = smov 0   ;;  %s1739_s19 = smov 0  }
   0x5   :  { %s1741_s20 = smov 0   ;;  %s1743_s21 = smov 0  }
   0x6 LB: > { %s1758_s22 = sadd.s32 4294967295, %s1692_s21   ;;  %s1155_s23 = sadd.s32 4294967294, %s1692_s21   ;;  %s1692_s21 = sphi %s1743_s21, %s2031_s21   ;;  %s1688_s20 = sphi %s1741_s20, %s2030_s20   ;;  %s1684_s19 = sphi %s1739_s19, %s2029_s19   ;;  %s1680_s18 = sphi %s1737_s18, %s2028_s18  }
   0x7   : > { %s1762_s24 = sadd.s32 1, %s1692_s21   ;;  %s29_s25 = sadd.s32 1, %s1688_s20 }
   0x8   : > { %s26_s26 = ssub.s32 %s1692_s21, %s1762_s24  ;;  %p36_p0 = scmp.ne.s32.totalorder %s1688_s20, %s1684_s19 }
   0x9   : > { %p27_p1 = scmp.eq.s32.totalorder %s26_s26, 0  ;;  %p37_p2 = scmp.eq.s32.totalorder %s1692_s21, 0 }
   0xa   : > { %p42_p3 = scmp.ne.s32.totalorder %s1684_s19, %s1680_s18  ;;  %p2010_p4 = scmp.eq.s32.totalorder %s1758_s22, 0 }
   0xb   : > { %s1774_s27 = scalar_select %p27_p1, %s1688_s20, %s29_s25  }
   0xc   : > { %p1776_p5 = por %p37_p2, %p36_p0  ;;  %p1782_p6 = por %p2010_p4, %p42_p3 }
   0xd   : > { %2013 = sst [smem:[#allocation12_spill]] %s1774_s27  ;;  %p150_p7 = scmp.eq.s32.totalorder %s1758_s22, 3 }
   0xe   : > { %s2014_s28 = scalar_select %p1776_p5, 1, 0 }
   0xf   : > { %s2015_s29 = scalar_select %p1782_p6, 1, 0 }
  0x10   : > { %p156_p8 = scmp.eq.s32.totalorder %s1155_s23, 3  ;;  %p1156_p9 = scmp.ge.s32.totalorder %s1692_s21, 1 }
  0x11   : > { %p163_p10 = scmp.lt.s32.totalorder %s1692_s21, 5  ;;  %p1789_p11 = por %p150_p7, %p36_p0 }
  0x12   : > { %p1793_p12 = por %p156_p8, %p42_p3  ;;  %s1694_s8 = smov [#allocation5]  }
  0x13   : > { %s2016_s30 = scalar_select %p1789_p11, 1, 0 }
  0x14   : > { %s2017_s6 = scalar_select %p1793_p12, 1, 0 }
  0x15   : > { %p1797_p13 = pnand %p1156_p9, %p163_p10  ;;  %s175_s9 = sshll.u32 %s1694_s8, 4  ;;  %s176_s9 = int_to_ptr.vmem [resolvable:$true] %s175_s9 }
  0x16   : > { %s1695_s11 = smov [#allocation7]   ;;  %s1538_s15 = scalar_lea.hbm %s2005_s1, 25088 }
  0x17   : > { %s2018_s7 = scalar_select %p1797_p13, 1, 0 }
  0x18   : > { %p1447_p1 = pneg %p1797_p13  ;;  %s191_s12 = sshll.u32 %s1695_s11, 4  ;;  %s1809_s12 = int_to_ptr.vmem [resolvable:$true] %s191_s12 }
  0x19   : > { %p1539_p0 = scmp.ne.s32.totalorder %s2005_s1, %s1538_s15  ;;  %p1545_p9 = scmp.lt.u32.totalorder %s1538_s15, %s2005_s1 }
  0x1a   : > { %p1805_p2 = pnand %p1447_p1, %p2010_p4 }
  0x1c   : > { %p1540_p3 = pneg %p1805_p2 }
  0x1e   : > { %p1541_p7 = pnand %p1540_p3, %p1539_p0 }
  0x20   : > { %p1542_p8 = pneg %p1541_p7 }
  0x22   : > { %p1547_p10 = pnand %p1545_p9, %p1542_p8 }
  0x24   : > { %1550 = shalt.err (!%p1547_p10)
}
  0x25   : > { %s1551_s26 = scalar_lea.vmem %s176_s9, 25088  ;;  %p1559_p11 = scmp.lt.s32.totalorder %s176_s9, %s176_s9 }
  0x26   : > { %p1552_p1 = scmp.ne.s32.totalorder %s176_s9, %s1551_s26  ;;  %p1560_p6 = scmp.lt.s32.totalorder %s1551_s26, %s1551_s26 }
  0x28   : > { %p1554_p4 = pnand %p1552_p1, %p1540_p3  ;;  %p1561_p13 = por %p1560_p6, %p1559_p11 }
  0x2a   : > { %p1555_p12 = pneg %p1554_p4 }
  0x2c   : > { %p1562_p5 = pnand %p1561_p13, %p1555_p12 }
  0x2e   : > { %1565 = shalt.err (!%p1562_p5)
}
  0x2f   : > { %s1696_s8 = smov 256   ;;  %s1697_s11 = smov 16  }
  0x30   : > { %1450 = dma.hbm_to_vmem [thread:$0]  (!%p1805_p2), %s2005_s1, 25088, %s176_s9, [#allocation6], %s1696_s8, %s1696_s8, %s1697_s11  }
  0x31   : > { %s1566_s17 = scalar_lea.hbm %s2007_s3, 2048 }
  0x32   : > { %p1567_p4 = scmp.ne.s32.totalorder %s2007_s3, %s1566_s17  ;;  %p1573_p11 = scmp.lt.u32.totalorder %s1566_s17, %s2007_s3 }
  0x34   : > { %p1569_p5 = pnand %p1567_p4, %p1540_p3 }
  0x36   : > { %p1570_p6 = pneg %p1569_p5 }
  0x38   : > { %p1575_p12 = pnand %p1573_p11, %p1570_p6 }
  0x3a   : > { %1578 = shalt.err (!%p1575_p12)
}
  0x3b   : > { %s1579_s9 = scalar_lea.vmem %s1809_s12, 2048  ;;  %p1587_p8 = scmp.lt.s32.totalorder %s1809_s12, %s1809_s12 }
  0x3c   : > { %p1580_p13 = scmp.ne.s32.totalorder %s1809_s12, %s1579_s9  ;;  %p1588_p9 = scmp.lt.s32.totalorder %s1579_s9, %s1579_s9 }
  0x3e   : > { %p1582_p0 = pnand %p1580_p13, %p1540_p3  ;;  %p1589_p10 = por %p1588_p9, %p1587_p8 }
  0x40   : > { %p1583_p7 = pneg %p1582_p0 }
  0x42   : > { %p1590_p1 = pnand %p1589_p10, %p1583_p7 }
  0x44   : > { %1593 = shalt.err (!%p1590_p1)
}
  0x45   : > { %s1698_s27 = smov 64   ;;  %s1699_s8 = smov 4  }
  0x46   : > { %1453 = dma.hbm_to_vmem [thread:$0]  (!%p1805_p2), %s2007_s3, 2048, %s1809_s12, [#allocation6], %s1698_s27, %s1698_s27, %s1699_s8  }
  0x47   : > { %p1159_p4 = scmp.ge.s32.totalorder %s1692_s21, 4 }
  0x48   : > { %p2020_p3 = scmp.ne.s32.totalorder (!%p1159_p4), %s2014_s28, 0 }
  0x49   : > { %204 = sbr.rel (%p1159_p4) target bundleno = 116 (0x74), region = 32 }
  0x50   : > { %207 = sbr.rel (!%p2020_p3) target bundleno = 116 (0x74), region = 36  ;;  %s208_s14 = sand.u32 (%p2020_p3), 1, %s1688_s20  }
  0x51   : > { %s1160_s15 = sshll.u32 (%p2020_p3), %s1692_s21, 1  ;;  %s1434_s16 = smul.u32 (%p2020_p3), 112, %s208_s14 }
  0x52   : > { %s214_s17 = ssub.s32 (%p2020_p3), 7, %s1160_s15  ;;  %s1866_s25 = scalar_lea.sflag (%p2020_p3), [#allocation3], %s208_s14 }
  0x53   : > { %p215_p5 = scmp.lt.s32.totalorder (%p2020_p3), %s214_s17, 2  ;;  %s212_s12 = scalar_lea.vmem (%p2020_p3), [#allocation2], %s1434_s16 }
  0x57   : > { %s2033_s17 = smov (!%p215_p5, %s214_s17), 2 }
  0x58   : > { %s1863_s23 = smul.u32 896, %s2033_s17 }
  0x5a   : > { %s220_s10 = ssub.s32 1792, %s1863_s23 }
  0x5b   : > { %221 = vsyncadd %s1866_s25, %s220_s10  ;;  %p1163_p2 = scmp.ne.s32.totalorder %s1863_s23, 0  ;;  %s1435_s28 = smul.u32 1792, %s1692_s21 }
  0x5c   : > { %s227_s26 = sshll.u32 %s212_s12, 4  ;;  %s1598_s15 = scalar_lea.hbm %s2004_s0, 6272  ;;  %s1876_s26 = int_to_ptr.vmem [resolvable:$true] %s227_s26 }
  0x5d   : > { %s1874_s8 = scalar_lea.hbm %s2004_s0, %s1435_s28 }
  0x5e   : > { %s1594_s11 = scalar_lea.hbm %s1874_s8, %s1863_s23  ;;  %p1599_p13 = scmp.lt.u32.totalorder %s1874_s8, %s2004_s0 }
  0x5f   : > { %p1595_p6 = scmp.ne.s32.totalorder %s1874_s8, %s1594_s11  ;;  %p1600_p0 = scmp.lt.u32.totalorder %s1598_s15, %s1594_s11 }
  0x60   : > { %p1602_p8 = scmp.lt.u32.totalorder %s1594_s11, %s1874_s8 }
  0x61   : > { %p1596_p11 = pnand %p1595_p6, %p1163_p2  ;;  %p1601_p7 = por %p1600_p0, %p1599_p13 }
  0x63   : > { %p1597_p12 = pneg %p1596_p11  ;;  %p1603_p9 = por %p1602_p8, %p1601_p7 }
  0x65   : > { %p1604_p10 = pnand %p1603_p9, %p1597_p12 }
  0x67   : > { %1607 = shalt.err (!%p1604_p10)
}
  0x68   : > { %s1608_s10 = scalar_lea.vmem %s1876_s26, %s1863_s23  ;;  %s1700_s12 = smov [#allocation2]  }
  0x69   : > { %p1609_p1 = scmp.ne.s32.totalorder %s1876_s26, %s1608_s10  ;;  %s1612_s28 = sshll.u32 %s1700_s12, 4  ;;  %s1613_s28 = int_to_ptr.vmem [resolvable:$false] %s1612_s28 }
  0x6a   : > { %s1614_s9 = scalar_lea.vmem %s1613_s28, 3584  ;;  %p1615_p5 = scmp.lt.s32.totalorder %s1876_s26, %s1613_s28 }
  0x6b   : > { %p1610_p4 = pnand %p1609_p1, %p1163_p2  ;;  %p1616_p6 = scmp.lt.s32.totalorder %s1614_s9, %s1608_s10 }
  0x6d   : > { %p1611_p3 = pneg %p1610_p4  ;;  %p1617_p11 = por %p1616_p6, %p1615_p5 }
  0x6f   : > { %p1618_p13 = pnand %p1617_p11, %p1611_p3 }
  0x71   : > { %1621 = shalt.err (!%p1618_p13)
}
  0x72   : > { %s1701_s27 = smov 896   ;;  %s1702_s11 = smov 56  }
  0x73   : > { %233 = dma.hbm_to_vmem [thread:$0]  (%p1163_p2), %s1874_s8, %s1863_s23, %s1876_s26, %s1866_s25, %s1701_s27, %s1701_s27, %s1702_s11  }
  0x74 PF: > { %p2021_p12 = scmp.ne.s32.totalorder %s2018_s7, 0 }
  0x75   : > { %s1906_s13 = sand.u32 (!%p2021_p12), 1, %s1684_s19   ;;  %p2022_p0 = scmp.ne.s32.totalorder (!%p2021_p12), %s2015_s29, 0 }
  0x76   : > { %239 = sbr.rel (%p2021_p12) target bundleno = 1063 (0x427), region = 40  ;;  %s242_s15 = scalar_lea.sflag (!%p2021_p12), [#allocation3], %s1906_s13 }
  0x77   : > { %s1436_s14 = smul.u32 (!%p2021_p12), 112, %s1906_s13 }
  0x79   : > { %s1910_s16 = scalar_lea.vmem (!%p2021_p12), [#allocation2], %s1436_s14 }
  0x7d   : > { %1667 = dma.done.wait (%p2022_p0), %s242_s15, 1792  }
  0x7e   : > { %1669 = vsyncadd (%p2022_p0), %s242_s15, 4294965504  ;;  %p2023_p2 = scmp.eq.s32.totalorder %s1758_s22, 0 }
  0x80   : > { %1671 = dma.done.wait (%p2023_p2), [#allocation6], 27136   ;;  %p2024_p7 = pmov %p2023_p2 }
  0x81   : > { %v371_v0 = vld [vmem:[#allocation5 + $0x208] sm:$0xff]  ;;  %v373_v1 = vld [vmem:[#allocation5 + $0x218] sm:$0xff]  ;;  %v370_v2 = vld [vmem:[#allocation5 + $0x200] sm:$0xff]  ;;  %vm514_vm0 = vcmask 130048   ;;  %s1170_s26 = sshll.u32 %s1906_s13, 4  ;;  %s1044_s17 = scalar_lea.sflag [#allocation4], %s1906_s13 }
  0x82   : > { %1673 = vsyncadd (%p2024_p7), [#allocation6], 4294940160  ;;  %v1286_v3 = vpack.c.bf16 %v373_v1, %v371_v0  ;;  %v372_v4 = vld [vmem:[#allocation5 + $0x210] sm:$0xff]  ;;  %v375_v5 = vld [vmem:[#allocation5 + $0x228] sm:$0xff]  ;;  %s279_s8 = scalar_lea.vmem [#allocation8], %s1170_s26  ;;  %p2025_p8 = scmp.ne.s32.totalorder %s2016_s30, 0 }
  0x83   : > { %v377_v6 = vld [vmem:[#allocation5 + $0x238] sm:$0xff]  ;;  %v1288_v7 = vpack.c.bf16 %v372_v4, %v370_v2  ;;  %v374_v9 = vld [vmem:[#allocation5 + $0x220] sm:$0xff]  ;;  %v376_v10 = vld [vmem:[#allocation5 + $0x230] sm:$0xff]  ;;  %s1191_s10 = sshll.u32 (%p2025_p8), %s1758_s22, 1 }
  0x84   : > { %v1290_v8 = vpack.c.bf16 %v377_v6, %v375_v5  ;;  %v379_v11 = vld [vmem:[#allocation5 + $0x248] sm:$0xff]  ;;  %1287 = vmatprep.subr.bf16.mxu0 %v1286_v3  ;;  %v381_v12 = vld [vmem:[#allocation5 + $0x258] sm:$0xff]  ;;  %v1292_v13 = vpack.c.bf16 %v376_v10, %v374_v9  ;;  %v378_v15 = vld [vmem:[#allocation5 + $0x240] sm:$0xff]  ;;  %s1052_s12 = ssub.s32 (%p2025_p8), 7, %s1191_s10 }
  0x85   : > { %1289 = vmatpush1.bf16.msra.mxu0 %v1288_v7  ;;  %v1294_v14 = vpack.c.bf16 %v381_v12, %v379_v11  ;;  %v380_v16 = vld [vmem:[#allocation5 + $0x250] sm:$0xff]  ;;  %v383_v17 = vld [vmem:[#allocation5 + $0x268] sm:$0xff]  ;;  %v385_v18 = vld [vmem:[#allocation5 + $0x278] sm:$0xff]  ;;  %p1053_p9 = scmp.lt.s32.totalorder (%p2025_p8), %s1052_s12, 2 }
  0x86   : > { %1291 = vmatprep.subr.bf16.mxu0 %v1290_v8  ;;  %v1296_v19 = vpack.c.bf16 %v380_v16, %v378_v15  ;;  %v1298_v20 = vpack.c.bf16 %v385_v18, %v383_v17  ;;  %v382_v21 = vld [vmem:[#allocation5 + $0x260] sm:$0xff]  ;;  %v384_v22 = vld [vmem:[#allocation5 + $0x270] sm:$0xff]  ;;  %v387_v23 = vld [vmem:[#allocation5 + $0x288] sm:$0xff] }
  0x87   : > { %v389_v24 = vld [vmem:[#allocation5 + $0x298] sm:$0xff]  ;;  %v1300_v25 = vpack.c.bf16 %v384_v22, %v382_v21  ;;  %v386_v27 = vld [vmem:[#allocation5 + $0x280] sm:$0xff]  ;;  %v388_v28 = vld [vmem:[#allocation5 + $0x290] sm:$0xff] }
  0x88   : > { %v1302_v26 = vpack.c.bf16 %v389_v24, %v387_v23  ;;  %v391_v29 = vld [vmem:[#allocation5 + $0x2a8] sm:$0xff]  ;;  %v393_v30 = vld [vmem:[#allocation5 + $0x2b8] sm:$0xff]  ;;  %v1304_v31 = vpack.c.bf16 %v388_v28, %v386_v27  ;;  %v390_v33 = vld [vmem:[#allocation5 + $0x2a0] sm:$0xff] }
  0x89   : > { %1293 = vmatpush1.bf16.msra.mxu0 %v1292_v13  ;;  %v1306_v32 = vpack.c.bf16 %v393_v30, %v391_v29  ;;  %v392_v34 = vld [vmem:[#allocation5 + $0x2b0] sm:$0xff]  ;;  %v395_v35 = vld [vmem:[#allocation5 + $0x2c8] sm:$0xff]  ;;  %v397_v36 = vld [vmem:[#allocation5 + $0x2d8] sm:$0xff] }
  0x8a   : > { %1295 = vmatprep.subr.bf16.mxu0 %v1294_v14  ;;  %v307_v37 = vld [vmem:[#allocation5 + $0x8] sm:$0xff]  ;;  %v309_v38 = vld [vmem:[#allocation5 + $0x18] sm:$0xff]  ;;  %v1308_v39 = vpack.c.bf16 %v392_v34, %v390_v33  ;;  %v394_v40 = vld [vmem:[#allocation5 + $0x2c0] sm:$0xff]  ;;  %v1310_v43 = vpack.c.bf16 %v397_v36, %v395_v35 }
  0x8b   : > { %v1222_v41 = vpack.c.bf16 %v309_v38, %v307_v37  ;;  %v306_v42 = vld [vmem:[#allocation5] sm:$0xff]  ;;  %v396_v44 = vld [vmem:[#allocation5 + $0x2d0] sm:$0xff]  ;;  %v399_v45 = vld [vmem:[#allocation5 + $0x2e8] sm:$0xff] }
  0x8c   : > { %v308_v46 = vld [vmem:[#allocation5 + $0x10] sm:$0xff]  ;;  %v401_v47 = vld [vmem:[#allocation5 + $0x2f8] sm:$0xff]  ;;  %v311_v49 = vld [vmem:[#allocation5 + $0x28] sm:$0xff]  ;;  %v1312_v54 = vpack.c.bf16 %v396_v44, %v394_v40 }
  0x8d   : > { %1297 = vmatpush1.bf16.msra.mxu0 %v1296_v19  ;;  %1223 = vmatprep.subr.bf16.mxu1 %v1222_v41  ;;  %v1224_v48 = vpack.c.bf16 %v308_v46, %v306_v42  ;;  %v313_v50 = vld [vmem:[#allocation5 + $0x38] sm:$0xff]  ;;  %v310_v52 = vld [vmem:[#allocation5 + $0x20] sm:$0xff]  ;;  %v312_v53 = vld [vmem:[#allocation5 + $0x30] sm:$0xff]  ;;  %v1314_v58 = vpack.c.bf16 %v401_v47, %v399_v45 }
  0x8e   : > { %1299 = vmatprep.subr.bf16.mxu0 %v1298_v20  ;;  %v1226_v51 = vpack.c.bf16 %v313_v50, %v311_v49  ;;  %v398_v55 = vld [vmem:[#allocation5 + $0x2e0] sm:$0xff]  ;;  %v1228_v56 = vpack.c.bf16 %v312_v53, %v310_v52  ;;  %v295_v57 = vld [vmem:[%s1910_s16 + $0x18] sm:$0xff]  ;;  %v400_v59 = vld [vmem:[#allocation5 + $0x2f0] sm:$0xff] }
  0x8f   : > { %1225 = vmatpush1.bf16.msra.mxu1 %v1224_v48  ;;  %v315_v60 = vld [vmem:[#allocation5 + $0x48] sm:$0xff]  ;;  %v317_v61 = vld [vmem:[#allocation5 + $0x58] sm:$0xff]  ;;  %662 = vmatprep.mubr.f32.mxu0 %v295_v57  ;;  %v314_v1 = vld [vmem:[#allocation5 + $0x40] sm:$0xff]  ;;  %v1316_v3 = vpack.c.bf16 %v400_v59, %v398_v55 }
  0x90   : > { %1227 = vmatprep.subr.bf16.mxu1 %v1226_v51  ;;  %v403_v62 = vld [vmem:[#allocation5 + $0x308] sm:$0xff]  ;;  %v405_v63 = vld [vmem:[#allocation5 + $0x318] sm:$0xff]  ;;  %v1230_v0 = vpack.c.bf16 %v317_v61, %v315_v60  ;;  %v316_v2 = vld [vmem:[#allocation5 + $0x50] sm:$0xff] }
  0x91   : > { %1301 = vmatpush1.bf16.msra.mxu0 %v1300_v25  ;;  %v402_v4 = vld [vmem:[#allocation5 + $0x300] sm:$0xff]  ;;  %v1232_v5 = vpack.c.bf16 %v316_v2, %v314_v1  ;;  %v319_v6 = vld [vmem:[#allocation5 + $0x68] sm:$0xff]  ;;  %v321_v7 = vld [vmem:[#allocation5 + $0x78] sm:$0xff]  ;;  %v1318_v8 = vpack.c.bf16 %v405_v63, %v403_v62 }
  0x92   : > { %1303 = vmatprep.subr.bf16.mxu0 %v1302_v26  ;;  %v404_v9 = vld [vmem:[#allocation5 + $0x310] sm:$0xff]  ;;  %v1234_v10 = vpack.c.bf16 %v321_v7, %v319_v6  ;;  %v318_v11 = vld [vmem:[#allocation5 + $0x60] sm:$0xff]  ;;  %v407_v13 = vld [vmem:[#allocation5 + $0x328] sm:$0xff] }
  0x93   : > { %1229 = vmatpush1.bf16.msra.mxu1 %v1228_v56  ;;  %v320_v12 = vld [vmem:[#allocation5 + $0x70] sm:$0xff]  ;;  %v409_v14 = vld [vmem:[#allocation5 + $0x338] sm:$0xff]  ;;  %v323_v15 = vld [vmem:[#allocation5 + $0x88] sm:$0xff]  ;;  %v1320_v17 = vpack.c.bf16 %v404_v9, %v402_v4 }
  0x94   : > { %1231 = vmatprep.subr.bf16.mxu1 %v1230_v0  ;;  %v325_v16 = vld [vmem:[#allocation5 + $0x98] sm:$0xff]  ;;  %v406_v18 = vld [vmem:[#allocation5 + $0x320] sm:$0xff]  ;;  %v408_v19 = vld [vmem:[#allocation5 + $0x330] sm:$0xff]  ;;  %v1236_v20 = vpack.c.bf16 %v320_v12, %v318_v11  ;;  %v1322_v21 = vpack.c.bf16 %v409_v14, %v407_v13 }
  0x95   : > { %1305 = vmatpush1.bf16.msra.mxu0 %v1304_v31  ;;  %v411_v22 = vld [vmem:[#allocation5 + $0x348] sm:$0xff]  ;;  %v1238_v23 = vpack.c.bf16 %v325_v16, %v323_v15  ;;  %v322_v24 = vld [vmem:[#allocation5 + $0x80] sm:$0xff]  ;;  %v324_v25 = vld [vmem:[#allocation5 + $0x90] sm:$0xff]  ;;  %v1324_v29 = vpack.c.bf16 %v408_v19, %v406_v18 }
  0x96   : > { %1307 = vmatprep.subr.bf16.mxu0 %v1306_v32  ;;  %v413_v26 = vld [vmem:[#allocation5 + $0x358] sm:$0xff]  ;;  %v327_v27 = vld [vmem:[#allocation5 + $0xa8] sm:$0xff]  ;;  %v410_v30 = vld [vmem:[#allocation5 + $0x340] sm:$0xff]  ;;  %v1240_v32 = vpack.c.bf16 %v324_v25, %v322_v24 }
  0x97   : > { %1233 = vmatpush1.bf16.msra.mxu1 %v1232_v5  ;;  %v329_v28 = vld [vmem:[#allocation5 + $0xb8] sm:$0xff]  ;;  %v412_v31 = vld [vmem:[#allocation5 + $0x350] sm:$0xff]  ;;  %v1326_v33 = vpack.c.bf16 %v413_v26, %v411_v22  ;;  %v415_v34 = vld [vmem:[#allocation5 + $0x368] sm:$0xff] }
  0x98   : > { %1235 = vmatprep.subr.bf16.mxu1 %v1234_v10  ;;  %v1242_v35 = vpack.c.bf16 %v329_v28, %v327_v27  ;;  %v326_v36 = vld [vmem:[#allocation5 + $0xa0] sm:$0xff]  ;;  %v328_v37 = vld [vmem:[#allocation5 + $0xb0] sm:$0xff]  ;;  %v417_v38 = vld [vmem:[#allocation5 + $0x378] sm:$0xff]  ;;  %v1328_v41 = vpack.c.bf16 %v412_v31, %v410_v30 }
  0x99   : > { %1309 = vmatpush1.bf16.msra.mxu0 %v1308_v39  ;;  %v331_v39 = vld [vmem:[#allocation5 + $0xc8] sm:$0xff]  ;;  %v333_v40 = vld [vmem:[#allocation5 + $0xd8] sm:$0xff]  ;;  %v414_v42 = vld [vmem:[#allocation5 + $0x360] sm:$0xff]  ;;  %v1244_v44 = vpack.c.bf16 %v328_v37, %v326_v36  ;;  %v1330_v45 = vpack.c.bf16 %v417_v38, %v415_v34 }
  0x9a   : > { %1311 = vmatprep.subr.bf16.mxu0 %v1310_v43  ;;  %v416_v43 = vld [vmem:[#allocation5 + $0x370] sm:$0xff]  ;;  %v419_v46 = vld [vmem:[#allocation5 + $0x388] sm:$0xff]  ;;  %v1246_v47 = vpack.c.bf16 %v333_v40, %v331_v39  ;;  %v330_v48 = vld [vmem:[#allocation5 + $0xc0] sm:$0xff] }
  0x9b   : > { %1237 = vmatpush1.bf16.msra.mxu1 %v1236_v20  ;;  %v332_v49 = vld [vmem:[#allocation5 + $0xd0] sm:$0xff]  ;;  %v421_v50 = vld [vmem:[#allocation5 + $0x398] sm:$0xff]  ;;  %v335_v51 = vld [vmem:[#allocation5 + $0xe8] sm:$0xff]  ;;  %v1332_v53 = vpack.c.bf16 %v416_v43, %v414_v42 }
  0x9c   : > { %1239 = vmatprep.subr.bf16.mxu1 %v1238_v23  ;;  %v337_v52 = vld [vmem:[#allocation5 + $0xf8] sm:$0xff]  ;;  %v420_v55 = vld [vmem:[#allocation5 + $0x390] sm:$0xff]  ;;  %v1248_v56 = vpack.c.bf16 %v332_v49, %v330_v48  ;;  %v1334_v57 = vpack.c.bf16 %v421_v50, %v419_v46  ;;  %v334_v60 = vld [vmem:[#allocation5 + $0xe0] sm:$0xff] }
  0x9d   : > { %1313 = vmatpush1.bf16.msra.mxu0 %v1312_v54  ;;  %v418_v54 = vld [vmem:[#allocation5 + $0x380] sm:$0xff]  ;;  %v1250_v59 = vpack.c.bf16 %v337_v52, %v335_v51  ;;  %v336_v61 = vld [vmem:[#allocation5 + $0xf0] sm:$0xff]  ;;  %v425_v62 = vld [vmem:[#allocation5 + $0x3b8] sm:$0xff] }
  0x9e   : > { %1315 = vmatprep.subr.bf16.mxu0 %v1314_v58  ;;  %v423_v58 = vld [vmem:[#allocation5 + $0x3a8] sm:$0xff]  ;;  %v341_v0 = vld [vmem:[#allocation5 + $0x118] sm:$0xff]  ;;  %v1336_v1 = vpack.c.bf16 %v420_v55, %v418_v54  ;;  %v422_v2 = vld [vmem:[#allocation5 + $0x3a0] sm:$0xff]  ;;  %v1252_v4 = vpack.c.bf16 %v336_v61, %v334_v60 }
  0x9f   : > { %1241 = vmatpush1.bf16.msra.mxu1 %v1240_v32  ;;  %v339_v63 = vld [vmem:[#allocation5 + $0x108] sm:$0xff]  ;;  %v1338_v5 = vpack.c.bf16 %v425_v62, %v423_v58  ;;  %v340_v9 = vld [vmem:[#allocation5 + $0x110] sm:$0xff]  ;;  %v429_v10 = vld [vmem:[#allocation5 + $0x3d8] sm:$0xff] }
  0xa0   : > { %1243 = vmatprep.subr.bf16.mxu1 %v1242_v35  ;;  %v427_v6 = vld [vmem:[#allocation5 + $0x3c8] sm:$0xff]  ;;  %v1254_v7 = vpack.c.bf16 %v341_v0, %v339_v63  ;;  %v345_v12 = vld [vmem:[#allocation5 + $0x138] sm:$0xff]  ;;  %v426_v14 = vld [vmem:[#allocation5 + $0x3c0] sm:$0xff] }
  0xa1   : > { %1317 = vmatpush1.bf16.msra.mxu0 %v1316_v3  ;;  %v424_v3 = vld [vmem:[#allocation5 + $0x3b0] sm:$0xff]  ;;  %v343_v11 = vld [vmem:[#allocation5 + $0x128] sm:$0xff]  ;;  %v342_v20 = vld [vmem:[#allocation5 + $0x120] sm:$0xff] }
  0xa2   : > { %1319 = vmatprep.subr.bf16.mxu0 %v1318_v8  ;;  %v338_v8 = vld [vmem:[#allocation5 + $0x100] sm:$0xff]  ;;  %v1340_v13 = vpack.c.bf16 %v424_v3, %v422_v2  ;;  %v428_v15 = vld [vmem:[#allocation5 + $0x3d0] sm:$0xff]  ;;  %v431_v18 = vld [vmem:[#allocation5 + $0x3e8] sm:$0xff]  ;;  %v1258_v19 = vpack.c.bf16 %v345_v12, %v343_v11 }
  0xa3   : > { %1245 = vmatpush1.bf16.msra.mxu1 %v1244_v44  ;;  %v1256_v16 = vpack.c.bf16 %v340_v9, %v338_v8  ;;  %v433_v22 = vld [vmem:[#allocation5 + $0x3f8] sm:$0xff]  ;;  %v347_v23 = vld [vmem:[#allocation5 + $0x148] sm:$0xff]  ;;  %v1344_v25 = vpack.c.bf16 %v428_v15, %v426_v14  ;;  %v430_v26 = vld [vmem:[#allocation5 + $0x3e0] sm:$0xff] }
  0xa4   : > { %1247 = vmatprep.subr.bf16.mxu1 %v1246_v47  ;;  %v349_v24 = vld [vmem:[#allocation5 + $0x158] sm:$0xff]  ;;  %v432_v27 = vld [vmem:[#allocation5 + $0x3f0] sm:$0xff]  ;;  %v435_v30 = vld [vmem:[#allocation5 + $0x408] sm:$0xff] }
  0xa5   : > { %1321 = vmatpush1.bf16.msra.mxu0 %v1320_v17  ;;  %v1342_v17 = vpack.c.bf16 %v429_v10, %v427_v6  ;;  %v1262_v31 = vpack.c.bf16 %v349_v24, %v347_v23  ;;  %v346_v32 = vld [vmem:[#allocation5 + $0x140] sm:$0xff]  ;;  %v437_v34 = vld [vmem:[#allocation5 + $0x418] sm:$0xff]  ;;  %v351_v35 = vld [vmem:[#allocation5 + $0x168] sm:$0xff]  ;;  %v1348_v37 = vpack.c.bf16 %v432_v27, %v430_v26 }
  0xa6   : > { %1323 = vmatprep.subr.bf16.mxu0 %v1322_v21  ;;  %v344_v21 = vld [vmem:[#allocation5 + $0x130] sm:$0xff]  ;;  %v353_v36 = vld [vmem:[#allocation5 + $0x178] sm:$0xff]  ;;  %v434_v38 = vld [vmem:[#allocation5 + $0x400] sm:$0xff]  ;;  %v1350_v42 = vpack.c.bf16 %v437_v34, %v435_v30 }
  0xa7   : > { %1249 = vmatpush1.bf16.msra.mxu1 %v1248_v56  ;;  %v1260_v28 = vpack.c.bf16 %v344_v21, %v342_v20  ;;  %v436_v39 = vld [vmem:[#allocation5 + $0x410] sm:$0xff]  ;;  %v439_v40 = vld [vmem:[#allocation5 + $0x428] sm:$0xff]  ;;  %v441_v43 = vld [vmem:[#allocation5 + $0x438] sm:$0xff]  ;;  %v1266_v44 = vpack.c.bf16 %v353_v36, %v351_v35 }
  0xa8   : > { %1251 = vmatprep.subr.bf16.mxu1 %v1250_v59  ;;  %v352_v46 = vld [vmem:[#allocation5 + $0x170] sm:$0xff]  ;;  %v355_v47 = vld [vmem:[#allocation5 + $0x188] sm:$0xff]  ;;  %v357_v48 = vld [vmem:[#allocation5 + $0x198] sm:$0xff]  ;;  %v1352_v51 = vpack.c.bf16 %v436_v39, %v434_v38  ;;  %v1354_v55 = vpack.c.bf16 %v441_v43, %v439_v40 }
  0xa9   : > { %1325 = vmatpush1.bf16.msra.mxu0 %v1324_v29  ;;  %v1346_v29 = vpack.c.bf16 %v433_v22, %v431_v18  ;;  %v293_v49 = vld [vmem:[%s1910_s16 + $0x8] sm:$0xff]  ;;  %v294_v50 = vld [vmem:[%s1910_s16 + $0x10] sm:$0xff] }
  0xaa   : > { %1327 = vmatprep.subr.bf16.mxu0 %v1326_v33  ;;  %v348_v33 = vld [vmem:[#allocation5 + $0x150] sm:$0xff]  ;;  %585 = vmatprep.mubr.f32.mxu1 %v293_v49  ;;  %v438_v52 = vld [vmem:[#allocation5 + $0x420] sm:$0xff]  ;;  %v443_v56 = vld [vmem:[#allocation5 + $0x448] sm:$0xff] }
  0xab   : > { %1253 = vmatpush1.bf16.msra.mxu1 %v1252_v4  ;;  %v354_v58 = vld [vmem:[#allocation5 + $0x180] sm:$0xff]  ;;  %v356_v59 = vld [vmem:[#allocation5 + $0x190] sm:$0xff]  ;;  %v445_v60 = vld [vmem:[#allocation5 + $0x458] sm:$0xff] }
  0xac   : > { %1255 = vmatprep.subr.bf16.mxu1 %v1254_v7  ;;  %v359_v61 = vld [vmem:[#allocation5 + $0x1a8] sm:$0xff]  ;;  %v361_v62 = vld [vmem:[#allocation5 + $0x1b8] sm:$0xff]  ;;  %v442_v63 = vld [vmem:[#allocation5 + $0x440] sm:$0xff]  ;;  %v1358_v8 = vpack.c.bf16 %v445_v60, %v443_v56 }
  0xad   : > { %1329 = vmatpush1.bf16.msra.mxu0 %v1328_v41  ;;  %v1264_v41 = vpack.c.bf16 %v348_v33, %v346_v32  ;;  %v444_v0 = vld [vmem:[#allocation5 + $0x450] sm:$0xff]  ;;  %v447_v3 = vld [vmem:[#allocation5 + $0x468] sm:$0xff]  ;;  %v449_v4 = vld [vmem:[#allocation5 + $0x478] sm:$0xff]  ;;  %v1274_v9 = vpack.c.bf16 %v361_v62, %v359_v61 }
  0xae   : > { %1331 = vmatprep.subr.bf16.mxu0 %v1330_v45  ;;  %v350_v45 = vld [vmem:[#allocation5 + $0x160] sm:$0xff]  ;;  %v301_v7 = vld [vmem:[%s1910_s16 + $0x48] sm:$0xff]  ;;  %v360_v10 = vld [vmem:[#allocation5 + $0x1b0] sm:$0xff]  ;;  %v1360_v18 = vpack.c.bf16 %v444_v0, %v442_v63  ;;  %v1362_v24 = vpack.c.bf16 %v449_v4, %v447_v3 }
  0xaf   : > { %1257 = vmatpush1.bf16.msra.mxu1 %v1256_v16  ;;  %v1268_v54 = vpack.c.bf16 %v352_v46, %v350_v45  ;;  %v358_v6 = vld [vmem:[#allocation5 + $0x1a0] sm:$0xff]  ;;  %v363_v11 = vld [vmem:[#allocation5 + $0x1c8] sm:$0xff]  ;;  %v365_v12 = vld [vmem:[#allocation5 + $0x1d8] sm:$0xff] }
  0xb0   : > { %1259 = vmatprep.subr.bf16.mxu1 %v1258_v19  ;;  %v446_v14 = vld [vmem:[#allocation5 + $0x460] sm:$0xff]  ;;  %v448_v15 = vld [vmem:[#allocation5 + $0x470] sm:$0xff]  ;;  %v451_v19 = vld [vmem:[#allocation5 + $0x488] sm:$0xff]  ;;  %v1276_v21 = vpack.c.bf16 %v360_v10, %v358_v6 }
  0xb1   : > { %1333 = vmatpush1.bf16.msra.mxu0 %v1332_v53  ;;  %v440_v53 = vld [vmem:[#allocation5 + $0x430] sm:$0xff]  ;;  %v362_v16 = vld [vmem:[#allocation5 + $0x1c0] sm:$0xff]  ;;  %v453_v20 = vld [vmem:[#allocation5 + $0x498] sm:$0xff]  ;;  %v1364_v30 = vpack.c.bf16 %v448_v15, %v446_v14 }
  0xb2   : > { %1335 = vmatprep.subr.bf16.mxu0 %v1334_v57  ;;  %v1270_v57 = vpack.c.bf16 %v357_v48, %v355_v47  ;;  %v1356_v2 = vpack.c.bf16 %v440_v53, %v438_v52  ;;  %v367_v22 = vld [vmem:[#allocation5 + $0x1e8] sm:$0xff]  ;;  %v369_v23 = vld [vmem:[#allocation5 + $0x1f8] sm:$0xff]  ;;  %v450_v26 = vld [vmem:[#allocation5 + $0x480] sm:$0xff]  ;;  %v1366_v36 = vpack.c.bf16 %v453_v20, %v451_v19 }
  0xb3   : > { %1261 = vmatpush1.bf16.msra.mxu1 %v1260_v28  ;;  %v452_v27 = vld [vmem:[#allocation5 + $0x490] sm:$0xff]  ;;  %v366_v28 = vld [vmem:[#allocation5 + $0x1e0] sm:$0xff]  ;;  %v457_v32 = vld [vmem:[#allocation5 + $0x4b8] sm:$0xff] }
  0xb4   : > { %1263 = vmatprep.subr.bf16.mxu1 %v1262_v31  ;;  %v455_v31 = vld [vmem:[#allocation5 + $0x4a8] sm:$0xff]  ;;  %v501_v35 = vld [vmem:[#allocation5 + $0x618] sm:$0xff]  ;;  %v454_v38 = vld [vmem:[#allocation5 + $0x4a0] sm:$0xff]  ;;  %v1368_v39 = vpack.c.bf16 %v452_v27, %v450_v26 }
  0xb5   : > { %1337 = vmatpush1.bf16.msra.mxu0 %v1336_v1  ;;  %v302_v1 = vld [vmem:[%s1910_s16 + $0x50] sm:$0xff]  ;;  %v499_v34 = vld [vmem:[#allocation5 + $0x608] sm:$0xff]  ;;  %v461_v47 = vld [vmem:[#allocation5 + $0x4d8] sm:$0xff] }
  0xb6   : > { %1339 = vmatprep.subr.bf16.mxu0 %v1338_v5  ;;  %v1272_v5 = vpack.c.bf16 %v356_v59, %v354_v58  ;;  %v1414_v43 = vpack.c.bf16 %v501_v35, %v499_v34  ;;  %v500_v45 = vld [vmem:[#allocation5 + $0x610] sm:$0xff]  ;;  %v459_v46 = vld [vmem:[#allocation5 + $0x4c8] sm:$0xff]  ;;  %v458_v52 = vld [vmem:[#allocation5 + $0x4c0] sm:$0xff] }
  0xb7   : > { %1265 = vmatpush1.bf16.msra.mxu1 %v1264_v41  ;;  %v1370_v41 = vpack.c.bf16 %v457_v32, %v455_v31  ;;  %v292_v49 = vld [vmem:[%s1910_s16] sm:$0xff]  ;;  %v299_v58 = vld [vmem:[%s1910_s16 + $0x38] sm:$0xff] }
  0xb8   : > { %1267 = vmatprep.subr.bf16.mxu1 %v1266_v44  ;;  %v498_v44 = vld [vmem:[#allocation5 + $0x600] sm:$0xff]  ;;  %v460_v53 = vld [vmem:[#allocation5 + $0x4d0] sm:$0xff]  ;;  %v467_v62 = vld [vmem:[#allocation5 + $0x508] sm:$0xff] }
  0xb9   : > { %1341 = vmatpush1.bf16.msra.mxu0 %v1340_v13  ;;  %v297_v13 = vld [vmem:[%s1910_s16 + $0x28] sm:$0xff]  ;;  %v300_v56 = vld [vmem:[%s1910_s16 + $0x40] sm:$0xff] }
  0xba   : > { %1343 = vmatprep.subr.bf16.mxu0 %v1342_v17  ;;  %v364_v17 = vld [vmem:[#allocation5 + $0x1d0] sm:$0xff]  ;;  %v462_v60 = vld [vmem:[#allocation5 + $0x4e0] sm:$0xff]  ;;  %v469_v63 = vld [vmem:[#allocation5 + $0x518] sm:$0xff] }
  0xbb   : > { %1269 = vmatpush1.bf16.msra.mxu1 %v1268_v54  ;;  %v1280_v33 = vpack.c.bf16 %v364_v17, %v362_v16  ;;  %v463_v54 = vld [vmem:[#allocation5 + $0x4e8] sm:$0xff]  ;;  %v464_v61 = vld [vmem:[#allocation5 + $0x4f0] sm:$0xff]  ;;  %v1382_v3 = vpack.c.bf16 %v469_v63, %v467_v62  ;;  %v466_v4 = vld [vmem:[#allocation5 + $0x500] sm:$0xff] }
  0xbc   : > { %1271 = vmatprep.subr.bf16.mxu1 %v1270_v57  ;;  %v1376_v57 = vpack.c.bf16 %v460_v53, %v458_v52  ;;  %v1380_v0 = vpack.c.bf16 %v464_v61, %v462_v60  ;;  %v471_v6 = vld [vmem:[#allocation5 + $0x528] sm:$0xff]  ;;  %v477_v14 = vld [vmem:[#allocation5 + $0x558] sm:$0xff]  ;;  %v474_v17 = vld [vmem:[#allocation5 + $0x540] sm:$0xff] }
  0xbd   : > { %1345 = vmatpush1.bf16.msra.mxu0 %v1344_v25  ;;  %v1278_v25 = vpack.c.bf16 %v365_v12, %v363_v11  ;;  %v470_v11 = vld [vmem:[#allocation5 + $0x520] sm:$0xff]  ;;  %v472_v12 = vld [vmem:[#allocation5 + $0x530] sm:$0xff]  ;;  %v479_v19 = vld [vmem:[#allocation5 + $0x568] sm:$0xff] }
  0xbe   : > { %1347 = vmatprep.subr.bf16.mxu0 %v1346_v29  ;;  %v368_v29 = vld [vmem:[#allocation5 + $0x1f0] sm:$0xff]  ;;  %v1388_v15 = vpack.c.bf16 %v472_v12, %v470_v11  ;;  %v481_v20 = vld [vmem:[#allocation5 + $0x578] sm:$0xff]  ;;  %v487_v31 = vld [vmem:[#allocation5 + $0x5a8] sm:$0xff] }
  0xbf   : > { %1273 = vmatpush1.bf16.msra.mxu1 %v1272_v5  ;;  %v1284_v40 = vpack.c.bf16 %v368_v29, %v366_v28  ;;  %v468_v5 = vld [vmem:[#allocation5 + $0x510] sm:$0xff]  ;;  %v485_v26 = vld [vmem:[#allocation5 + $0x598] sm:$0xff]  ;;  %v482_v29 = vld [vmem:[#allocation5 + $0x580] sm:$0xff] }
  0xc0   : > { %1275 = vmatprep.subr.bf16.mxu1 %v1274_v9  ;;  %v305_v9 = vld [vmem:[%s1910_s16 + $0x68] sm:$0xff]  ;;  %v486_v35 = vld [vmem:[#allocation5 + $0x5a0] sm:$0xff]  ;;  %v303_v52 = vld [vmem:[%s1910_s16 + $0x58] sm:$0xff] }
  0xc1   : > { %1349 = vmatpush1.bf16.msra.mxu0 %v1348_v37  ;;  %v1282_v37 = vpack.c.bf16 %v369_v23, %v367_v22  ;;  %v1394_v22 = vpack.c.bf16 %v481_v20, %v479_v19  ;;  %v478_v23 = vld [vmem:[#allocation5 + $0x560] sm:$0xff]  ;;  %v489_v32 = vld [vmem:[#allocation5 + $0x5b8] sm:$0xff]  ;;  %v1516_v63 = vld [vmem:[#allocation7 + $0x68] sm:$0xff]  }
  0xc2   : > { %1351 = vmatprep.subr.bf16.mxu0 %v1350_v42  ;;  %v456_v42 = vld [vmem:[#allocation5 + $0x4b0] sm:$0xff]  ;;  %v1402_v34 = vpack.c.bf16 %v489_v32, %v487_v31  ;;  %v1506_v53 = vld [vmem:[#allocation7 + $0x40] sm:$0xff]   ;;  %v1513_v60 = vld [vmem:[#allocation7 + $0x18] sm:$0xff]  }
  0xc3   : > { %1277 = vmatpush1.bf16.msra.mxu1 %v1276_v21  ;;  %v1372_v48 = vpack.c.bf16 %v456_v42, %v454_v38  ;;  %v493_v38 = vld [vmem:[#allocation5 + $0x5d8] sm:$0xff]  ;;  %v492_v42 = vld [vmem:[#allocation5 + $0x5d0] sm:$0xff]  ;;  %v1514_v61 = vld [vmem:[#allocation7 + $0x60] sm:$0xff]  }
  0xc4   : > { %663 = vmatmul.mubr.f32.vlgmr.msra.gmra.mrb[0].mxu0 %v294_v50  ;;  %1279 = vmatprep.subr.bf16.mxu1 %v1278_v25  ;;  %v1416_v50 = vpack.c.bf16 %v500_v45, %v498_v44  ;;  %v483_v25 = vld [vmem:[#allocation5 + $0x588] sm:$0xff]  ;;  %v497_v44 = vld [vmem:[#allocation5 + $0x5f8] sm:$0xff]  ;;  %v1515_v62 = vld [vmem:[#allocation7 + $0x20] sm:$0xff]  }
  0xc5   : > { %1353 = vmatpush1.bf16.msra.mxu0 %v1352_v51  ;;  %668 = vmatprep.mubr.f32.mxu0 %v302_v1  ;;  %v1374_v51 = vpack.c.bf16 %v461_v47, %v459_v46  ;;  %v1703_v1 = vmov 0.0   ;;  %v1398_v28 = vpack.c.bf16 %v485_v26, %v483_v25  ;;  %v494_v47 = vld [vmem:[#allocation5 + $0x5e0] sm:$0xff] }
  0xc6   : > { %1355 = vmatprep.subr.bf16.mxu0 %v1354_v55  ;;  %v465_v55 = vld [vmem:[#allocation5 + $0x4f8] sm:$0xff] }
  0xc7   : > { %1281 = vmatpush1.bf16.msra.mxu1 %v1280_v33  ;;  %v1378_v59 = vpack.c.bf16 %v465_v55, %v463_v54  ;;  %v1507_v54 = vld [vmem:[#allocation7] sm:$0xff]   ;;  %v1508_v55 = vld [vmem:[#allocation7 + $0x48] sm:$0xff]  }
  0xc8   : > { %669 = vmatmul.mubr.f32.gmra.mrb[2].mxu0 %v301_v7  ;;  %1283 = vmatprep.subr.bf16.mxu1 %v1282_v37  ;;  %v473_v7 = vld [vmem:[#allocation5 + $0x538] sm:$0xff]  ;;  %v491_v37 = vld [vmem:[#allocation5 + $0x5c8] sm:$0xff] }
  0xc9   : > { %1357 = vmatpush1.bf16.msra.mxu0 %v1356_v2  ;;  %739 = vmatprep.mubr.f32.mxu0 %v297_v13  ;;  %v298_v2 = vld [vmem:[%s1910_s16 + $0x30] sm:$0xff]  ;;  %v1386_v10 = vpack.c.bf16 %v473_v7, %v471_v6  ;;  %v475_v13 = vld [vmem:[#allocation5 + $0x548] sm:$0xff] }
  0xca   : > { %1359 = vmatprep.subr.bf16.mxu0 %v1358_v8  ;;  %v1384_v8 = vpack.c.bf16 %v468_v5, %v466_v4  ;;  %v1390_v16 = vpack.c.bf16 %v477_v14, %v475_v13  ;;  %v1521_v4 = vld [vmem:[#allocation7 + $0x38] sm:$0xff]   ;;  %v504_v13 = vlaneseq }
  0xcb   : > { %1285 = vmatpush1.bf16.msra.mxu1 %v1284_v40  ;;  %v1406_v40 = vpack.c.bf16 %v493_v38, %v491_v37 }
  0xcc   : > { %1415 = vmatprep.subr.bf16.mxu1 %v1414_v43  ;;  %v495_v43 = vld [vmem:[#allocation5 + $0x5e8] sm:$0xff]  ;;  %v505_v14 = vshrl.u32 %v504_v13, 7 }
  0xcd   : > { %1361 = vmatpush1.bf16.msra.mxu0 %v1360_v18  ;;  %v476_v18 = vld [vmem:[#allocation5 + $0x550] sm:$0xff]  ;;  %v1410_v46 = vpack.c.bf16 %v497_v44, %v495_v43 }
  0xce   : > { %1363 = vmatprep.subr.bf16.mxu0 %v1362_v24  ;;  %586 = vmatmul.mubr.f32.vlgmr.msra.gmra.mrb[0].mxu1 %v292_v49  ;;  %v1392_v21 = vpack.c.bf16 %v476_v18, %v474_v17  ;;  %v480_v24 = vld [vmem:[#allocation5 + $0x570] sm:$0xff]  ;;  %v510_v17 = vsub.s32 1, %v505_v14 }
  0xcf   : > { %1417 = vmatpush1.bf16.msra.mxu1 %v1416_v50  ;;  %591 = vmatprep.mubr.f32.mxu1 %v300_v56  ;;  %v1396_v27 = vpack.c.bf16 %v480_v24, %v478_v23  ;;  %v296_v50 = vld [vmem:[%s1910_s16 + $0x20] sm:$0xff]  ;;  %v1509_v56 = vld [vmem:[#allocation7 + $0x8] sm:$0xff]  }
  0xd0   : > { %1200 = vmatprep.subr.bf16.mxu1 %v1506_v53 }
  0xd1   : > { %1365 = vmatpush1.bf16.msra.mxu0 %v1364_v30  ;;  %v484_v30 = vld [vmem:[#allocation5 + $0x590] sm:$0xff] }
  0xd2   : > { %1367 = vmatprep.subr.bf16.mxu0 %v1366_v36  ;;  %592 = vmatmul.mubr.f32.gmra.mrb[2].mxu1 %v299_v58  ;;  %v1400_v33 = vpack.c.bf16 %v484_v30, %v482_v29  ;;  %v488_v36 = vld [vmem:[#allocation5 + $0x5b0] sm:$0xff] }
  0xd3   : > { %816 = vmatprep.mubr.f32.mxu1 %v1703_v1  ;;  %v1511_v58 = vld [vmem:[#allocation7 + $0x10] sm:$0xff]  }
  0xd5   : > { %1369 = vmatpush1.bf16.msra.mxu0 %v1368_v39  ;;  %v1404_v39 = vpack.c.bf16 %v488_v36, %v486_v35 }
  0xd6   : > { %1371 = vmatprep.subr.bf16.mxu0 %v1370_v41  ;;  %1171 = vmatmul.mubr.msk.f32.vlgmr.msra.gmra.mrb[4].mxu1 %vm514_vm0, %v298_v2  ;;  %v490_v41 = vld [vmem:[#allocation5 + $0x5c0] sm:$0xff]  ;;  %v1519_v2 = vld [vmem:[#allocation7 + $0x30] sm:$0xff]  }
  0xd7   : > { %822 = vmatprep.mubr.f32.mxu1 %v1703_v1  ;;  %v1408_v45 = vpack.c.bf16 %v492_v42, %v490_v41  ;;  %1201 = vmatpush3.bf16.msra.mxu1 %v1507_v54  ;;  %v1518_v1 = vld [vmem:[#allocation7 + $0x70] sm:$0xff]  }
  0xd8   : > { %1202 = vmatprep.subr.bf16.mxu1 %v1508_v55 }
  0xd9   : > { %1373 = vmatpush1.bf16.msra.mxu0 %v1372_v48  ;;  %v496_v48 = vld [vmem:[#allocation5 + $0x5f0] sm:$0xff] }
  0xda   : > { %1375 = vmatprep.subr.bf16.mxu0 %v1374_v51  ;;  %1172 = vmatmul.mubr.msk.f32.gmra.mrb[6].mxu1 %vm514_vm0, %v305_v9  ;;  %v1412_v49 = vpack.c.bf16 %v496_v48, %v494_v47  ;;  %v304_v51 = vld [vmem:[%s1910_s16 + $0x60] sm:$0xff] }
  0xdb   : > { %1203 = vmatpush3.bf16.msra.mxu1 %v1509_v56  ;;  %v1173_v56 = vld [vmem:[%s2008_s4] ss:$0 sm:$0xff] }
  0xdd   : > { %1377 = vmatpush1.bf16.msra.mxu0 %v1376_v57  ;;  %v1510_v57 = vld [vmem:[#allocation7 + $0x50] sm:$0xff]  }
  0xde   : > { %1379 = vmatprep.subr.bf16.mxu0 %v1378_v59  ;;  %1204 = vmatprep.subr.bf16.mxu1 %v1510_v57  ;;  %v1512_v59 = vld [vmem:[#allocation7 + $0x58] sm:$0xff]  }
  0xdf   : > { %1205 = vmatpush3.bf16.msra.mxu1 %v1511_v58 }
  0xe0   : > { %1206 = vmatprep.subr.bf16.mxu1 %v1512_v59 }
  0xe1   : > { %1381 = vmatpush1.bf16.msra.mxu0 %v1380_v0  ;;  %v1517_v0 = vld [vmem:[#allocation7 + $0x28] sm:$0xff]  }
  0xe2   : > { %1383 = vmatprep.subr.bf16.mxu0 %v1382_v3  ;;  %v1520_v3 = vld [vmem:[#allocation7 + $0x78] sm:$0xff]  }
  0xe3   : > { %1207 = vmatpush3.bf16.msra.mxu1 %v1513_v60 }
  0xe4   : > { %1208 = vmatprep.subr.bf16.mxu1 %v1514_v61 }
  0xe5   : > { %1385 = vmatpush1.bf16.msra.mxu0 %v1384_v8 }
  0xe6   : > { %1387 = vmatprep.subr.bf16.mxu0 %v1386_v10 }
  0xe7   : > { %1209 = vmatpush3.bf16.msra.mxu1 %v1515_v62 }
  0xe8   : > { %1210 = vmatprep.subr.bf16.mxu1 %v1516_v63 }
  0xe9   : > { %1389 = vmatpush1.bf16.msra.mxu0 %v1388_v15  ;;  %v506_v15 = vsub.s32 0, %v505_v14 }
  0xea   : > { %1391 = vmatprep.subr.bf16.mxu0 %v1390_v16  ;;  %v502_v16 = vld [vmem:[%s2006_s2] sm:$0x3] }
  0xeb   : > { %1211 = vmatpush3.bf16.msra.mxu1 %v1517_v0  ;;  %v507_v18 = vrot.slane %v502_v16, %v506_v15  ;;  %v511_v19 = vrot.slane %v502_v16, %v510_v17 }
  0xec   : > { %1212 = vmatprep.subr.bf16.mxu1 %v1518_v1 }
  0xed   : > { %1393 = vmatpush1.bf16.msra.mxu0 %v1392_v21 }
  0xee   : > { %1395 = vmatprep.subr.bf16.mxu0 %v1394_v22 }
  0xef   : > { %1213 = vmatpush3.bf16.msra.mxu1 %v1519_v2 }
  0xf0   : > { %1214 = vmatprep.subr.bf16.mxu1 %v1520_v3 }
  0xf1   : > { %1397 = vmatpush1.bf16.msra.mxu0 %v1396_v27 }
  0xf2   : > { %1399 = vmatprep.subr.bf16.mxu0 %v1398_v28 }
  0xf3   : > { %1215 = vmatpush3.bf16.msra.mxu1 %v1521_v4 }
  0xf5   : > { %1401 = vmatpush1.bf16.msra.mxu0 %v1400_v33 }
  0xf6   : > { %1403 = vmatprep.subr.bf16.mxu0 %v1402_v34 }
  0xf9   : > { %1405 = vmatpush1.bf16.msra.mxu0 %v1404_v39 }
  0xfa   : > { %1407 = vmatprep.subr.bf16.mxu0 %v1406_v40 }
  0xfd   : > { %1409 = vmatpush1.bf16.msra.mxu0 %v1408_v45 }
  0xfe   : > { %1411 = vmatprep.subr.bf16.mxu0 %v1410_v46 }
 0x101   : > { %1413 = vmatpush1.bf16.msra.mxu0 %v1412_v49 }
 0x104   : > { %740 = vmatmul.mubr.f32.vlgmr.msra.gmra.mrb[0].mxu0 %v296_v50 }
 0x105   : > { %745 = vmatprep.mubr.f32.mxu0 %v304_v51 }
 0x108   : > { %746 = vmatmul.mubr.f32.gmra.mrb[2].mxu0 %v303_v52 }
 0x1a1   : > { %v587_v5 = vpop.f32.mrb[0].mxu1 }
 0x1a2   : > { %v589_v6 = vpop.f32.mrb[1].mxu1  ;;  %v588_v20 = vadd.f32 %v587_v5, %v507_v18 }
 0x1a3   : > { %v590_v21 = vadd.f32 %v589_v6, %v511_v19 }
 0x1a5   : > { %v593_v7 = vpop.f32.mrb[2].mxu1 }
 0x1a6   : > { %v595_v8 = vpop.f32.mrb[3].mxu1  ;;  %v594_v26 = vadd.f32 %v593_v7, %v507_v18 }
 0x1a7   : > { %v596_v28 = vadd.f32 %v595_v8, %v511_v19 }
 0x1a9   : > { %v818_v9 = vpop.f32.mrb[4].mxu1 }
 0x1aa   : > { %v820_v10 = vpop.f32.mrb[5].mxu1 }
 0x1ad   : > { %v824_v11 = vpop.f32.mrb[6].mxu1 }
 0x1ae   : > { %v826_v12 = vpop.f32.mrb[7].mxu1 }
 0x1d7   : > { %v741_v22 = vpop.f32.mrb[0].mxu0 }
 0x1d8   : > { %v1419_v23 = vadd.f32 %v741_v22, %v588_v20  ;;  %v743_v24 = vpop.f32.mrb[1].mxu0 }
 0x1d9   : > { %v1422_v25 = vadd.f32 %v743_v24, %v590_v21 }
 0x1da   : > { %v1420_v27 = vadd.f32 %v1419_v23, %v818_v9 }
 0x1db   : > { %v1423_v29 = vadd.f32 %v1422_v25, %v820_v10  ;;  %v747_v30 = vpop.f32.mrb[2].mxu0 }
 0x1dc   : > { %v829_v31 = vmul.f32 0.5, %v1420_v27  ;;  %v1425_v32 = vadd.f32 %v747_v30, %v594_v26  ;;  %v749_v33 = vpop.f32.mrb[3].mxu0 }
 0x1dd   : > { %v830_v34 = vmul.f32 0.5, %v1423_v29  ;;  %v1428_v35 = vadd.f32 %v749_v33, %v596_v28 }
 0x1de   : > { %1522 = vtanh.f32 %v829_v31  ;;  %v1426_v36 = vadd.f32 %v1425_v32, %v824_v11 }
 0x1df   : > { %1524 = vtanh.f32 %v830_v34  ;;  %v1429_v37 = vadd.f32 %v1428_v35, %v826_v12 }
 0x1e0   : > { %v831_v38 = vmul.f32 0.5, %v1426_v36 }
 0x1e1   : > { %v832_v39 = vmul.f32 0.5, %v1429_v37 }
 0x1e2   : > { %1526 = vtanh.f32 %v831_v38 }
 0x1e3   : > { %1528 = vtanh.f32 %v832_v39 }
 0x1e8   : > { %v1523_v40 = vpop.eup %1522 }
 0x1e9   : > { %v1525_v41 = vpop.eup %1524  ;;  %v837_v42 = vadd.f32 1.0, %v1523_v40 }
 0x1ea   : > { %v838_v44 = vadd.f32 1.0, %v1525_v41 }
 0x1eb   : > { %v841_v48 = vmul.f32 0.5, %v837_v42 }
 0x1ec   : > { %v1527_v43 = vpop.eup %1526  ;;  %v842_v50 = vmul.f32 0.5, %v838_v44 }
 0x1ed   : > { %v1529_v45 = vpop.eup %1528  ;;  %v839_v46 = vadd.f32 1.0, %v1527_v43 }
 0x1ee   : > { %v840_v47 = vadd.f32 1.0, %v1529_v45 }
 0x1ef   : > { %v843_v49 = vmul.f32 0.5, %v839_v46 }
 0x1f0   : > { %v844_v51 = vmul.f32 0.5, %v840_v47 }
 0x1f1   : > { %v845_v52 = vpack.c.bf16 %v843_v49, %v841_v48 }
 0x1f2   : > { %v846_v53 = vpack.c.bf16 %v844_v51, %v842_v50 }
 0x1f4   : > { %1014 = vmatprep.mubr.bf16.mxu1 %v846_v53 }
 0x1f5   : > { %1015 = vmatmul.mubr.bf16.vlgmr.msra.gmra.mrb[8].mxu1 %v845_v52 }
 0x2c8   : > { %v1216_v54 = vpop.f32.mrb[8].mxu1 }
 0x2c9   : > { %v1217_v55 = vpop.f32.mrb[9].mxu1 }
 0x2ca   : > { %v1218_v57 = vadd.f32 %v1217_v55, %v1216_v54  ;;  %v1219_v58 = vpop.f32.mrb[10].mxu1 }
 0x2cb   : > { %v1220_v59 = vpop.f32.mrb[11].mxu1 }
 0x2cc   : > { %v1221_v60 = vadd.f32 %v1220_v59, %v1219_v58  ;;  %v1017_v61 = vadd.f32 %v1218_v57, %v1173_v56 }
 0x2ce   : > { %1023 = vmax.xlane.f32.xlu0 %v1017_v61  ;;  %v1020_v62 = vadd.f32 %v1221_v60, %v1173_v56 }
 0x2d2   : > { %1025 = vmax.xlane.f32.xlu0 %v1020_v62 }
 0x35b   : > { %v1024_v63 = vpop.xlane.xlu0 %1023 }
 0x35c   : > { %v1027_v0 = vsub.f32 %v1017_v61, %v1024_v63 }
 0x35e   : > { %v1029_v1 = vmul.f32 1.442695, %v1027_v0 }
 0x35f   : > { %v1026_v2 = vpop.xlane.xlu0 %1025 }
 0x360   : > { %1530 = vpow2.f32 %v1029_v1  ;;  %v1028_v3 = vsub.f32 %v1020_v62, %v1026_v2 }
 0x362   : > { %v1031_v4 = vmul.f32 1.442695, %v1028_v3 }
 0x364   : > { %1532 = vpow2.f32 %v1031_v4 }
 0x36a   : > { %v1531_v5 = vpop.eup %1530 }
 0x36b   : > { %1033 = vadd.xlane.f32.xlu1 %v1531_v5 }
 0x36e   : > { %v1533_v6 = vpop.eup %1532 }
 0x36f   : > { %1035 = vadd.xlane.f32.xlu1 %v1533_v6 }
 0x3f8   : > { %v1034_v7 = vpop.xlane.xlu1 %1033 }
 0x3f9   : > { %1534 = vrcp.f32 %v1034_v7 }
 0x3fc   : > { %v1036_v8 = vpop.xlane.xlu1 %1035 }
 0x3fd   : > { %1536 = vrcp.f32 %v1036_v8 }
 0x403   : > { %v1535_v9 = vpop.eup %1534 }
 0x404   : > { %v1039_v10 = vmul.f32 %v1535_v9, %v1531_v5  ;;  %1050 = sbr.rel (!%p2025_p8) target bundleno = 1063 (0x427), region = 56 }
 0x406   : > { %1041 = vst [vmem:[%s279_s8] sm:$0xff] %v1039_v10 }
 0x407   : > { %v1537_v11 = vpop.eup %1536 }
 0x408   : > { %v1040_v12 = vmul.f32 %v1537_v11, %v1533_v6 }
 0x40a   : > { %1042 = vst [vmem:[%s279_s8 + $0x8] sm:$0xff] %v1040_v12 }
 0x40b   : > { %s2035_s12 = smov (!%p1053_p9, %s1052_s12), 2 }
 0x40c   : > { %s1947_s28 = sshll.u32 %s2035_s12, 7 }
 0x40d   : > { %s1057_s9 = ssub.s32 256, %s1947_s28 }
 0x40e   : > { %1058 = vsyncadd %s1044_s17, %s1057_s9  ;;  %p1193_p10 = scmp.ne.s32.totalorder %s1947_s28, 0  ;;  %s1199_s27 = sshll.u32 %s1758_s22, 8 }
 0x40f   : > { %s1957_s14 = scalar_lea.hbm %s2009_s5, %s1199_s27  ;;  %s1063_s15 = sshll.u32 %s279_s8, 4  ;;  %s1959_s15 = int_to_ptr.vmem [resolvable:$true] %s1063_s15 }
 0x410   : > { %s1622_s16 = scalar_lea.vmem %s1959_s15, %s1947_s28  ;;  %s1704_s29 = smov [#allocation8]  }
 0x411   : > { %p1623_p1 = scmp.ne.s32.totalorder %s1959_s15, %s1622_s16  ;;  %s1626_s7 = sshll.u32 %s1704_s29, 4  ;;  %s1627_s7 = int_to_ptr.vmem [resolvable:$false] %s1626_s7 }
 0x412   : > { %s1628_s22 = scalar_lea.vmem %s1627_s7, 512  ;;  %p1629_p5 = scmp.lt.s32.totalorder %s1959_s15, %s1627_s7 }
 0x413   : > { %p1624_p4 = pnand %p1623_p1, %p1193_p10  ;;  %p1630_p6 = scmp.lt.s32.totalorder %s1628_s22, %s1622_s16 }
 0x415   : > { %p1625_p3 = pneg %p1624_p4  ;;  %p1631_p11 = por %p1630_p6, %p1629_p5 }
 0x417   : > { %p1632_p13 = pnand %p1631_p11, %p1625_p3 }
 0x419   : > { %1635 = shalt.err (!%p1632_p13)
}
 0x41a   : > { %s1636_s23 = scalar_lea.hbm %s1957_s14, %s1947_s28  ;;  %s1640_s8 = scalar_lea.hbm %s2009_s5, 896 }
 0x41b   : > { %p1637_p12 = scmp.ne.s32.totalorder %s1957_s14, %s1636_s23  ;;  %p1641_p7 = scmp.lt.u32.totalorder %s1957_s14, %s2009_s5 }
 0x41c   : > { %p1642_p8 = scmp.lt.u32.totalorder %s1640_s8, %s1636_s23  ;;  %p1644_p1 = scmp.lt.u32.totalorder %s1636_s23, %s1957_s14 }
 0x41d   : > { %p1638_p0 = pnand %p1637_p12, %p1193_p10 }
 0x41e   : > { %p1643_p9 = por %p1642_p8, %p1641_p7 }
 0x41f   : > { %p1639_p2 = pneg %p1638_p0 }
 0x420   : > { %p1645_p4 = por %p1644_p1, %p1643_p9 }
 0x422   : > { %p1646_p3 = pnand %p1645_p4, %p1639_p2 }
 0x424   : > { %1649 = shalt.err (!%p1646_p3)
}
 0x425   : > { %s1705_s9 = smov 128   ;;  %s1706_s27 = smov 8  }
 0x426   : > { %1069 = dma.vmem_to_hbm [thread:$0]  (%p1193_p10), %s1959_s15, %s1947_s28, %s1957_s14, %s1044_s17, %s1705_s9, %s1705_s9, %s1706_s27  }
 0x427 PF: > { %p1462_p5 = scmp.ge.s32.totalorder %s1692_s21, 2  ;;  %s1078_s30 = sand.u32 1, %s1680_s18  }
 0x428   : > { %p2026_p6 = scmp.ne.s32.totalorder %s2017_s6, 0  ;;  %s1079_s11 = scalar_lea.sflag [#allocation4], %s1078_s30 }
 0x42a   : > { %p1455_p11 = pnand %p1462_p5, %p2026_p6 }
 0x42c   : > { %1675 = dma.done.wait (!%p1455_p11), %s1079_s11, 256  }
 0x42d   : > { %1677 = vsyncadd (!%p1455_p11), %s1079_s11, 4294967040  ;;  %s2027_s16 = sld [smem:[#allocation12_spill]]  ;;  %p19_p13 = scmp.ge.s32.totalorder %s1762_s24, 6  }
 0x42e   : > { %s2028_s18 = smov %s1684_s19  ;;  %s2029_s19 = smov %s1688_s20 }
 0x42f   : > { %s2031_s21 = smov %s1762_s24  ;;  %21 = sbr.rel (!%p19_p13) target bundleno = 6 (0x6), region = 93 }
 0x433   : > { %s2030_s20 = smov %s2027_s16 }
 0x436   :  { %1084 = vsyncpa [#allocation3], 1 }
 0x437   :  { %1086 = vsyncpa [#allocation3 + $0x1], 1 }
 0x438   :  { %1087 = vsyncpa [#allocation6], 1 }
 0x439   :  { %1088 = vsyncpa [#allocation4], 1 }
 0x43a   :  { %1090 = vsyncpa [#allocation4 + $0x1], 1 }

</bundles_post_ra>
